<compile_context>
chip_gen: v6e
topology: v6e:2x2x1
jax: 0.10.0
libtpu: 0.0.40
codegen_flags: <defaults>
</compile_context>

<pallas_src>
import jax
import jax.numpy as jnp
from jax import lax
from jax.experimental import pallas as pl
from jax.experimental.pallas import tpu as pltpu


def _choose_tile_h(H, W):
    """Smallest divisor of H whose row-tile is lane-dense (tileH*W % 128 == 0)."""
    for t in range(1, H + 1):
        if H % t == 0 and (t * W) % 128 == 0:
            return t
    return H  # fallback: whole image as one tile


def _make_conv_relu_kernel(W, Cin, G, K, tile_h):
    """Kernel body with static shapes closed over."""
    KKC = K * K * Cin
    rows = tile_h * W

    def kernel(x_ref, w_ref, b_ref, o_ref, col_ref):
        # x_ref:   (1, Hp, Wp, Cin)    padded NHWC image, VMEM-resident per batch
        # w_ref:   (G, K*K*Cin)        weights, columns ordered (kh, kw, cin)
        # b_ref:   (G, 1)              bias
        # o_ref:   (1, 1, G, tile_h*W) lane-dense output tile
        # col_ref: (tile_h*W, K*K*Cin) im2col scratch (VMEM)
        i = pl.program_id(1)
        row0 = pl.multiple_of(i * tile_h, tile_h)

        # Build the im2col matrix once per tile: K row-block loads, K*K slab stores.
        for kh in range(K):
            xk = x_ref[0, pl.ds(row0 + kh, tile_h), :, :]        # (tile_h, Wp, Cin)
            for kw in range(K):
                patch = xk[:, kw:kw + W, :]                      # (tile_h, W, Cin)
                c0 = (kh * K + kw) * Cin
                col_ref[:, c0:c0 + Cin] = patch.reshape(rows, Cin)

        # Single MXU matmul, transposed so the result minor dim is lane-dense:
        #   (G, KKC) contracted with (rows, KKC) over KKC -> (G, rows)
        acc = lax.dot_general(
            w_ref[...], col_ref[...],
            dimension_numbers=(((1,), (1,)), ((), ())),
            preferred_element_type=jnp.float32)                  # (G, rows) f32

        acc = acc + b_ref[...]                                   # (G,1) broadcast, f32
        acc = jnp.maximum(acc, 0.0)                              # ReLU, f32 epilogue
        o_ref[...] = acc.reshape(1, 1, G, rows).astype(o_ref.dtype)

    return kernel


def rdb_conv_forward(x_nchw, weight_oihw, bias, kSize=3):
    """Conv2d(Cin, G, kSize, padding=(kSize-1)//2, stride=1) + ReLU.

    x_nchw:      (N, Cin, H, W)   float32
    weight_oihw: (G, Cin, k, k)   float32  (PyTorch layout)
    bias:        (G,)             float32
    returns:     (N, G, H, W)     float32
    """
    N, Cin, H, W = x_nchw.shape
    G = weight_oihw.shape[0]
    K = kSize
    assert K % 2 == 1, "padding=(kSize-1)//2 only matches the reference for odd kSize"
    pad = (K - 1) // 2

    tile_h = _choose_tile_h(H, W)
    n_h = H // tile_h
    rows = tile_h * W
    Hp, Wp = H + 2 * pad, W + 2 * pad
    KKC = K * K * Cin

    # Glue (XLA side): NCHW -> NHWC + spatial zero-pad; weight -> (G, K*K*Cin).
    x_nhwc = jnp.transpose(x_nchw, (0, 2, 3, 1))                       # (N,H,W,Cin)
    x_pad = jnp.pad(x_nhwc, ((0, 0), (pad, pad), (pad, pad), (0, 0)))  # (N,Hp,Wp,Cin)
    w_mat = jnp.transpose(weight_oihw, (0, 2, 3, 1)).reshape(G, KKC)   # (G, K*K*Cin)
    b_col = bias.reshape(G, 1).astype(jnp.float32)                     # (G, 1)

    kernel = _make_conv_relu_kernel(W, Cin, G, K, tile_h)

    itemsize = x_pad.dtype.itemsize
    flops = 2 * N * H * W * K * K * Cin * G
    bytes_accessed = int((x_pad.size + w_mat.size + b_col.size + N * n_h * G * rows)
                         * itemsize)
    cost = pl.CostEstimate(flops=flops, transcendentals=0,
                           bytes_accessed=bytes_accessed)

    out_raw = pl.pallas_call(
        kernel,
        out_shape=jax.ShapeDtypeStruct((N, n_h, G, rows), x_nchw.dtype),
        grid_spec=pltpu.PrefetchScalarGridSpec(
            num_scalar_prefetch=0,
            grid=(N, n_h),
            in_specs=[
                # Padded image: resident across the H-tile axis (index_map ignores i).
                pl.BlockSpec((1, Hp, Wp, Cin), lambda b, i: (b, 0, 0, 0)),
                # Grid-invariant operands (tiny; Buffered(1) would save a buffer
                # at large Cin — left default for robustness).
                pl.BlockSpec((G, KKC), lambda b, i: (0, 0)),
                pl.BlockSpec((G, 1), lambda b, i: (0, 0)),
            ],
            out_specs=pl.BlockSpec((1, 1, G, rows), lambda b, i: (b, i, 0, 0)),
            scratch_shapes=[pltpu.VMEM((rows, KKC), jnp.float32)],
        ),
        compiler_params=pltpu.CompilerParams(
            dimension_semantics=("parallel", "parallel"),
            vmem_limit_bytes=32 * 1024 * 1024),
        cost_estimate=cost,
    )(x_pad, w_mat, b_col)

    # (N, n_h, G, tile_h*W) -> (N, G, H, W): pure reshape/transpose glue.
    out = out_raw.reshape(N, n_h, G, tile_h, W)
    out = jnp.transpose(out, (0, 2, 1, 3, 4)).reshape(N, G, H, W)
    return out


def _reference_conv_relu(x_nchw, weight_oihw, bias):
    """Pure-JAX reference for correctness check."""
    out = lax.conv_general_dilated(
        x_nchw, weight_oihw,
        window_strides=(1, 1), padding="SAME",
        dimension_numbers=("NCHW", "OIHW", "NCHW"))
    out = out + bias.reshape(1, -1, 1, 1)
    return jnp.maximum(out, 0.0)


if __name__ == "__main__":
    # Module config: inChannels=4, growRate=8, kSize=3.  Small test shapes.
    N, Cin, H, W = 2, 4, 16, 16
    G, K = 8, 3

    key = jax.random.PRNGKey(0)
    kx, kw, kb = jax.random.split(key, 3)

    x = jax.random.normal(kx, (N, Cin, H, W), dtype=jnp.float32)

    # Deterministic PyTorch-style init: U(-bound, bound), bound = 1/sqrt(Cin*K*K)
    fan_in = Cin * K * K
    bound = 1.0 / (fan_in ** 0.5)
    weight = jax.random.uniform(kw, (G, Cin, K, K), dtype=jnp.float32,
                                minval=-bound, maxval=bound)
    bias = jax.random.uniform(kb, (G,), dtype=jnp.float32,
                              minval=-bound, maxval=bound)

    out = rdb_conv_forward(x, weight, bias, kSize=K)
    out = jax.block_until_ready(out)

    ref = _reference_conv_relu(x, weight, bias)
    assert out.shape == (N, G, H, W), out.shape
    assert jnp.allclose(out, ref, atol=1e-5, rtol=1e-5), "mismatch vs reference"

    print("KERNEL_OK")
</pallas_src>

<mosaic_0001>
module attributes {stable_mosaic.version = 11 : i64} {
  func.func @kernel(%arg0: i32, %arg1: i32, %arg2: memref<1x18x18x4xf32, #tpu.memory_space<vmem>>, %arg3: memref<8x36xf32, #tpu.memory_space<vmem>>, %arg4: memref<8x1xf32, #tpu.memory_space<vmem>>, %arg5: memref<1x1x8x128xf32, #tpu.memory_space<vmem>>, %arg6: memref<128x36xf32, #tpu.memory_space<vmem>>) attributes {dimension_semantics = [#tpu.dimension_semantics<parallel>, #tpu.dimension_semantics<parallel>], iteration_bounds = array<i64: 2, 2>, scalar_prefetch = 0 : i64, scratch_operands = 1 : i64, tpu.core_type = #tpu.core_type<tc>, window_params = [{transform_indices = @transform_0, window_bounds = array<i64: 1, 18, 18, 4>}, {pipeline_mode = #tpu.pipeline_mode<synchronous>, transform_indices = @transform_1, window_bounds = array<i64: 8, 36>}, {pipeline_mode = #tpu.pipeline_mode<synchronous>, transform_indices = @transform_2, window_bounds = array<i64: 8, 1>}, {transform_indices = @transform_3, window_bounds = array<i64: 1, 1, 8, 128>}]} {
    %c8_i32 = arith.constant 8 : i32
    %0 = arith.muli %arg1, %c8_i32 : i32
    %1 = tpu.assume_multiple %0, 8 : i32
    %c0_i32 = arith.constant 0 : i32
    %2 = arith.addi %1, %c0_i32 : i32
    %c0 = arith.constant 0 : index
    %3 = arith.index_cast %2 : i32 to index
    %c0_0 = arith.constant 0 : index
    %c0_1 = arith.constant 0 : index
    %4 = vector.load %arg2[%c0, %3, %c0_0, %c0_1] : memref<1x18x18x4xf32, #tpu.memory_space<vmem>>, vector<1x8x18x4xf32>
    %5 = vector.shape_cast %4 : vector<1x8x18x4xf32> to vector<8x18x4xf32>
    %6 = vector.extract_strided_slice %5 {offsets = [0, 0, 0], sizes = [8, 16, 4], strides = [1, 1, 1]} : vector<8x18x4xf32> to vector<8x16x4xf32>
    %7 = vector.shape_cast %6 : vector<8x16x4xf32> to vector<128x4xf32>
    %c0_2 = arith.constant 0 : index
    %c0_3 = arith.constant 0 : index
    %8 = vector.load %arg6[%c0_2, %c0_3] : memref<128x36xf32, #tpu.memory_space<vmem>>, vector<128x4xf32>
    tpu.vector_store %arg6[%c0_2, %c0_3], %7 {strides = array<i32>} : memref<128x36xf32, #tpu.memory_space<vmem>>, vector<128x4xf32>,
    %9 = vector.extract_strided_slice %5 {offsets = [0, 1, 0], sizes = [8, 16, 4], strides = [1, 1, 1]} : vector<8x18x4xf32> to vector<8x16x4xf32>
    %10 = vector.shape_cast %9 : vector<8x16x4xf32> to vector<128x4xf32>
    %c0_4 = arith.constant 0 : index
    %c4 = arith.constant 4 : index
    %11 = vector.load %arg6[%c0_4, %c4] : memref<128x36xf32, #tpu.memory_space<vmem>>, vector<128x4xf32>
    tpu.vector_store %arg6[%c0_4, %c4], %10 {strides = array<i32>} : memref<128x36xf32, #tpu.memory_space<vmem>>, vector<128x4xf32>,
    %12 = vector.extract_strided_slice %5 {offsets = [0, 2, 0], sizes = [8, 16, 4], strides = [1, 1, 1]} : vector<8x18x4xf32> to vector<8x16x4xf32>
    %13 = vector.shape_cast %12 : vector<8x16x4xf32> to vector<128x4xf32>
    %c0_5 = arith.constant 0 : index
    %c8 = arith.constant 8 : index
    %14 = vector.load %arg6[%c0_5, %c8] : memref<128x36xf32, #tpu.memory_space<vmem>>, vector<128x4xf32>
    tpu.vector_store %arg6[%c0_5, %c8], %13 {strides = array<i32>} : memref<128x36xf32, #tpu.memory_space<vmem>>, vector<128x4xf32>,
    %c1_i32 = arith.constant 1 : i32
    %15 = arith.addi %1, %c1_i32 : i32
    %c0_6 = arith.constant 0 : index
    %16 = arith.index_cast %15 : i32 to index
    %c0_7 = arith.constant 0 : index
    %c0_8 = arith.constant 0 : index
    %17 = vector.load %arg2[%c0_6, %16, %c0_7, %c0_8] : memref<1x18x18x4xf32, #tpu.memory_space<vmem>>, vector<1x8x18x4xf32>
    %18 = vector.shape_cast %17 : vector<1x8x18x4xf32> to vector<8x18x4xf32>
    %19 = vector.extract_strided_slice %18 {offsets = [0, 0, 0], sizes = [8, 16, 4], strides = [1, 1, 1]} : vector<8x18x4xf32> to vector<8x16x4xf32>
    %20 = vector.shape_cast %19 : vector<8x16x4xf32> to vector<128x4xf32>
    %c0_9 = arith.constant 0 : index
    %c12 = arith.constant 12 : index
    %21 = vector.load %arg6[%c0_9, %c12] : memref<128x36xf32, #tpu.memory_space<vmem>>, vector<128x4xf32>
    tpu.vector_store %arg6[%c0_9, %c12], %20 {strides = array<i32>} : memref<128x36xf32, #tpu.memory_space<vmem>>, vector<128x4xf32>,
    %22 = vector.extract_strided_slice %18 {offsets = [0, 1, 0], sizes = [8, 16, 4], strides = [1, 1, 1]} : vector<8x18x4xf32> to vector<8x16x4xf32>
    %23 = vector.shape_cast %22 : vector<8x16x4xf32> to vector<128x4xf32>
    %c0_10 = arith.constant 0 : index
    %c16 = arith.constant 16 : index
    %24 = vector.load %arg6[%c0_10, %c16] : memref<128x36xf32, #tpu.memory_space<vmem>>, vector<128x4xf32>
    tpu.vector_store %arg6[%c0_10, %c16], %23 {strides = array<i32>} : memref<128x36xf32, #tpu.memory_space<vmem>>, vector<128x4xf32>,
    %25 = vector.extract_strided_slice %18 {offsets = [0, 2, 0], sizes = [8, 16, 4], strides = [1, 1, 1]} : vector<8x18x4xf32> to vector<8x16x4xf32>
    %26 = vector.shape_cast %25 : vector<8x16x4xf32> to vector<128x4xf32>
    %c0_11 = arith.constant 0 : index
    %c20 = arith.constant 20 : index
    %27 = vector.load %arg6[%c0_11, %c20] : memref<128x36xf32, #tpu.memory_space<vmem>>, vector<128x4xf32>
    tpu.vector_store %arg6[%c0_11, %c20], %26 {strides = array<i32>} : memref<128x36xf32, #tpu.memory_space<vmem>>, vector<128x4xf32>,
    %c2_i32 = arith.constant 2 : i32
    %28 = arith.addi %1, %c2_i32 : i32
    %c0_12 = arith.constant 0 : index
    %29 = arith.index_cast %28 : i32 to index
    %c0_13 = arith.constant 0 : index
    %c0_14 = arith.constant 0 : index
    %30 = vector.load %arg2[%c0_12, %29, %c0_13, %c0_14] : memref<1x18x18x4xf32, #tpu.memory_space<vmem>>, vector<1x8x18x4xf32>
    %31 = vector.shape_cast %30 : vector<1x8x18x4xf32> to vector<8x18x4xf32>
    %32 = vector.extract_strided_slice %31 {offsets = [0, 0, 0], sizes = [8, 16, 4], strides = [1, 1, 1]} : vector<8x18x4xf32> to vector<8x16x4xf32>
    %33 = vector.shape_cast %32 : vector<8x16x4xf32> to vector<128x4xf32>
    %c0_15 = arith.constant 0 : index
    %c24 = arith.constant 24 : index
    %34 = vector.load %arg6[%c0_15, %c24] : memref<128x36xf32, #tpu.memory_space<vmem>>, vector<128x4xf32>
    tpu.vector_store %arg6[%c0_15, %c24], %33 {strides = array<i32>} : memref<128x36xf32, #tpu.memory_space<vmem>>, vector<128x4xf32>,
    %35 = vector.extract_strided_slice %31 {offsets = [0, 1, 0], sizes = [8, 16, 4], strides = [1, 1, 1]} : vector<8x18x4xf32> to vector<8x16x4xf32>
    %36 = vector.shape_cast %35 : vector<8x16x4xf32> to vector<128x4xf32>
    %c0_16 = arith.constant 0 : index
    %c28 = arith.constant 28 : index
    %37 = vector.load %arg6[%c0_16, %c28] : memref<128x36xf32, #tpu.memory_space<vmem>>, vector<128x4xf32>
    tpu.vector_store %arg6[%c0_16, %c28], %36 {strides = array<i32>} : memref<128x36xf32, #tpu.memory_space<vmem>>, vector<128x4xf32>,
    %38 = vector.extract_strided_slice %31 {offsets = [0, 2, 0], sizes = [8, 16, 4], strides = [1, 1, 1]} : vector<8x18x4xf32> to vector<8x16x4xf32>
    %39 = vector.shape_cast %38 : vector<8x16x4xf32> to vector<128x4xf32>
    %c0_17 = arith.constant 0 : index
    %c32 = arith.constant 32 : index
    %40 = vector.load %arg6[%c0_17, %c32] : memref<128x36xf32, #tpu.memory_space<vmem>>, vector<128x4xf32>
    tpu.vector_store %arg6[%c0_17, %c32], %39 {strides = array<i32>} : memref<128x36xf32, #tpu.memory_space<vmem>>, vector<128x4xf32>,
    %c0_18 = arith.constant 0 : index
    %c0_19 = arith.constant 0 : index
    %41 = vector.load %arg3[%c0_18, %c0_19] : memref<8x36xf32, #tpu.memory_space<vmem>>, vector<8x36xf32>
    %c0_20 = arith.constant 0 : index
    %c0_21 = arith.constant 0 : index
    %42 = vector.load %arg6[%c0_20, %c0_21] : memref<128x36xf32, #tpu.memory_space<vmem>>, vector<128x36xf32>
    %cst = arith.constant dense<0.000000e+00> : vector<8x128xf32>
    %43 = tpu.matmul %41, %42, %cst {dimension_numbers = #tpu.dot_dimension_numbers<[1], [1], [0], [0], [0, 0, 1, 0], [], []>} : vector<8x36xf32>, vector<128x36xf32>, vector<8x128xf32> -> vector<8x128xf32>
    %c0_22 = arith.constant 0 : index
    %c0_23 = arith.constant 0 : index
    %44 = vector.load %arg4[%c0_22, %c0_23] : memref<8x1xf32, #tpu.memory_space<vmem>>, vector<8x1xf32>
    %45 = vector.broadcast %44 : vector<8x1xf32> to vector<8x128xf32>
    %46 = arith.addf %43, %45 : vector<8x128xf32>
    %cst_24 = arith.constant 0.000000e+00 : f32
    %47 = vector.broadcast %cst_24 : f32 to vector<8x128xf32>
    %48 = arith.maximumf %46, %47 : vector<8x128xf32>
    %49 = vector.shape_cast %48 : vector<8x128xf32> to vector<1x1x8x128xf32>
    %c0_25 = arith.constant 0 : index
    %c0_26 = arith.constant 0 : index
    %c0_27 = arith.constant 0 : index
    %c0_28 = arith.constant 0 : index
    %50 = vector.load %arg5[%c0_25, %c0_26, %c0_27, %c0_28] : memref<1x1x8x128xf32, #tpu.memory_space<vmem>>, vector<1x1x8x128xf32>
    tpu.vector_store %arg5[%c0_25, %c0_26, %c0_27, %c0_28], %49 {strides = array<i32>} : memref<1x1x8x128xf32, #tpu.memory_space<vmem>>, vector<1x1x8x128xf32>,
    return
  }
  func.func @transform_0(%arg0: i32, %arg1: i32) -> (i32, i32, i32, i32) {
    %c0_i32 = arith.constant 0 : i32
    %c0_i32_0 = arith.constant 0 : i32
    %c0_i32_1 = arith.constant 0 : i32
    %c0_i32_2 = arith.constant 0 : i32
    return %arg0, %c0_i32, %c0_i32_0, %c0_i32_1 : i32, i32, i32, i32
  }
  func.func @transform_1(%arg0: i32, %arg1: i32) -> (i32, i32) {
    %c0_i32 = arith.constant 0 : i32
    %c0_i32_0 = arith.constant 0 : i32
    %c0_i32_1 = arith.constant 0 : i32
    return %c0_i32, %c0_i32_0 : i32, i32
  }
  func.func @transform_2(%arg0: i32, %arg1: i32) -> (i32, i32) {
    %c0_i32 = arith.constant 0 : i32
    %c0_i32_0 = arith.constant 0 : i32
    %c0_i32_1 = arith.constant 0 : i32
    return %c0_i32, %c0_i32_0 : i32, i32
  }
  func.func @transform_3(%arg0: i32, %arg1: i32) -> (i32, i32, i32, i32) {
    %c0_i32 = arith.constant 0 : i32
    %c0_i32_0 = arith.constant 0 : i32
    %c0_i32_1 = arith.constant 0 : i32
    return %arg0, %arg1, %c0_i32, %c0_i32_0 : i32, i32, i32, i32
  }
}

</mosaic_0001>

<bundles_post_ra>
// kernel: tpu_custom_call.1
= control target key start
LH: loop header
LB: loop body
LE: loop exit
PB: predicated region body
PF: predicated region fallthrough
CT: control target
= control target key end

     0   :  { %8 = vsyncpa [#allocation4], 0  ;;  %s2554_s0 = inlined_call_operand.vmem [shape: f32[2,18,18,4], index: 0, kind: input, shape index: {}]   ;;  %s2555_s1 = inlined_call_operand.vmem [shape: f32[8,36], index: 1, kind: input, shape index: {}]   ;;  %s2556_s2 = inlined_call_operand.vmem [shape: f32[8,1], index: 2, kind: input, shape index: {}]   ;;  %s2557_s3 = inlined_call_operand.hbm [shape: f32[2,2,8,128], index: 3, kind: output, shape index: {}]  }
   0x1   :  { %10 = vsyncpa [#allocation4 + $0x1], 0  ;;  %s1705_s12 = smov 0   ;;  %s1707_s13 = smov 0  }
   0x2   :  { %s1709_s14 = smov 0   ;;  %s1711_s15 = smov 0  }
   0x3   :  { %s1713_s16 = smov 0   ;;  %s1715_s17 = smov 0  }
   0x4   :  { %s1717_s18 = smov 0   ;;  %s1719_s19 = smov 0  }
   0x5 LB: > { %s1360_s20 = sadd.s32 4294967295, %s1671_s19   ;;  %s1361_s21 = sadd.s32 4294967294, %s1671_s19   ;;  %s1671_s19 = sphi %s1719_s19, %s16_s19   ;;  %s1667_s18 = sphi %s1717_s18, %s2566_s18   ;;  %s1663_s17 = sphi %s1715_s17, %s2565_s17   ;;  %s1659_s16 = sphi %s1713_s16, %s2564_s16   ;;  %s1655_s15 = sphi %s1711_s15, %s2563_s15   ;;  %s1651_s14 = sphi %s1709_s14, %s2562_s14   ;;  %s1647_s13 = sphi %s1707_s13, %s2561_s13   ;;  %s1643_s12 = sphi %s1705_s12, %s2560_s12  }
   0x6   : > { %s25_s22 = sadd.s32 1, %s1663_s17  ;;  %s28_s23 = sadd.s32 1, %s1667_s18 }
   0x7   : > { %p26_p0 = scmp.ge.s32.totalorder %s25_s22, 2  ;;  %p115_p1 = scmp.ne.s32.totalorder %s1651_s14, %s1647_s13 }
   0x8   : > { %p116_p2 = scmp.eq.s32.totalorder %s1360_s20, 3  ;;  %p121_p5 = scmp.ne.s32.totalorder %s1647_s13, %s1643_s12 }
   0x9   : > { %s2568_s22 = smov (%p26_p0, %s25_s22), 0  ;;  %s2570_s23 = smov (!%p26_p0, %s28_s23), %s1667_s18 }
   0xa   : > { %s101_s24 = ssub.s32 %s1663_s17, %s2568_s22  ;;  %p1756_p3 = por %p116_p2, %p115_p1 }
   0xb   : > { %p30_p4 = scmp.ge.s32.totalorder %s2570_s23, 2  ;;  %p122_p6 = scmp.eq.s32.totalorder %s1361_s21, 3 }
   0xc   : > { %p1364_p7 = scmp.ge.s32.totalorder %s1671_s19, 1  ;;  %p154_p9 = scmp.lt.s32.totalorder %s1671_s19, 5 }
   0xd   : > { %s2572_s23 = smov (%p30_p4, %s2570_s23), 0  ;;  %p1765_p8 = por %p122_p6, %p121_p5 }
   0xe   : > { %s100_s27 = ssub.s32 %s1667_s18, %s2572_s23  ;;  %s105_s28 = sadd.s32 1, %s1651_s14 }
   0xf   : > { %s102_s29 = sor.u32 %s101_s24, %s100_s27  ;;  %p155_p10 = pnand %p1364_p7, %p154_p9 }
  0x10   : > { %p103_p11 = scmp.eq.s32.totalorder %s102_s29, 0  ;;  %p178_p12 = scmp.lt.s32.totalorder (!%p155_p10), %s1659_s16, 1 }
  0x11   : > { %158 = sbr.rel (%p155_p10) target bundleno = 621 (0x26d), region = 32  ;;  %s1673_s11 = smov (!%p155_p10), 12  }
  0x12   : > { %s1774_s30 = scalar_select %p103_p11, %s1651_s14, %s105_s28  }
  0x13   : > { %s1368_s5 = smul.u32 (!%p155_p10), 192, %s1655_s15  ;;  %s1674_s20 = smov (!%p155_p10), 4  }
  0x14   : > { %s1675_s21 = smov (!%p155_p10), 24   ;;  %s1676_s24 = smov (!%p155_p10), 8  }
  0x15   : > { %s1677_s27 = smov (!%p155_p10), 16   ;;  %s1678_s28 = smov (!%p155_p10), 20  }
  0x16   : > { %s179_s4 = scalar_select %p178_p12, %s1659_s16, 1  ;;  %vm210_vm0 = vcmask 31744   ;;  %vm251_vm1 = vcmask 1046528   ;;  %vm357_vm2 = vcmask 1045504   ;;  %v1681_v51 = vmov 0.0  }
  0x17   : > { %s1679_s29 = smov 28   ;;  %1460 = vmatprep.subr.mxu0 %v1681_v51  ;;  %vm340_vm3 = vcmask 64544   ;;  %vm446_vm4 = vcmask 97344   ;;  %vm554_vm5 = vcmask 130144   ;;  %vm667_vm6 = vcmask 162944  }
  0x18   : > { %s1495_s6 = smul.u32 432, %s179_s4  ;;  %s1680_s4 = smov 32   ;;  %vm772_vm7 = vcmask 195744   ;;  %vm880_vm8 = vcmask 228544   ;;  %vm993_vm9 = vcmask 261344   ;;  %vm1098_vm10 = vcmask 294144  }
  0x19   : > { %vm1138_vm11 = vcmask 293888   ;;  %vm1682_vm12 = vmmov 0  }
  0x1a   : > { %s182_s9 = scalar_lea.vmem %s2554_s0, %s1495_s6  ;;  %1492 = vmatprep.mubr.msk.f32.mxu0 %vm1682_vm12, %v1681_v51 }
  0x1b   : > { %s1782_s10 = scalar_lea.vmem %s182_s9, %s1368_s5  ;;  %s175_s9 = sand.u32 1, %s1647_s13  }
  0x1c   : > { %v1785_v0 = vld [vmem:[%s1782_s10 + $0xc8] sm:$0xff]  ;;  %v1788_v1 = vld [vmem:[%s1782_s10 + $0xb0] sm:$0xff]  ;;  %v209_v2 = vld [vmem:[%s1782_s10 + $0xb8] sm:$0x3]  ;;  %s1263_s5 = scalar_lea.sflag [#allocation4], %s175_s9 }
  0x1d   : > { %536 = vrot.lane.b32.xlu1 %v1785_v0, %s1673_s11  ;;  %v1794_v3 = vrot.slane %v1788_v1, 1  ;;  %v290_v4 = vrot.slane %v209_v2, 1  ;;  %v1797_v5 = vld [vmem:[%s1782_s10 + $0xa8] sm:$0xff]  ;;  %226 = vst.msk [vmem:[#allocation2 + $0x78] sm:$0xff] %vm210_vm0, %v1788_v1  ;;  %v1802_v6 = vrot.slane %v1785_v0, 1  ;;  %v1805_v7 = vld [vmem:[%s1782_s10 + $0xe0] sm:$0xff] }
  0x1e   : > { %v1808_v8 = vrot.slane %v1788_v1, 2  ;;  %v396_v9 = vrot.slane %v209_v2, 2  ;;  %v1394_v10 = vld [vmem:[%s1782_s10 + $0xd0] sm:$0x3]  ;;  %225 = vst.msk [vmem:[#allocation2 + $0x70] sm:$0xff] %vm210_vm0, %v1797_v5  ;;  %v1817_v13 = vld [vmem:[%s1782_s10 + $0x98] sm:$0xff] }
  0x1f   : > { %v291_v11 = vsel %vm251_vm1, %v1794_v3, %v290_v4  ;;  %v617_v12 = vrot.slane %v1394_v10, 1  ;;  %v287_v15 = vrot.slane %v1797_v5, 1  ;;  %v1825_v16 = vld [vmem:[%s1782_s10 + $0x90] sm:$0xff]  ;;  %224 = vst.msk [vmem:[#allocation2 + $0x68] sm:$0xff] %vm210_vm0, %v1817_v13  ;;  %v1830_v17 = vrot.slane %v1785_v0, 2  ;;  %v1835_v20 = vld [vmem:[%s1782_s10 + $0x80] sm:$0xff] }
  0x20   : > { %322 = vrot.lane.b32.xlu0 %v291_v11, %s1674_s20  ;;  %v397_v14 = vsel %vm357_vm2, %v1808_v8, %v396_v9  ;;  %v722_v19 = vrot.slane %v1394_v10, 2  ;;  %v1838_v21 = vld [vmem:[%s1782_s10 + $0x78] sm:$0xff]  ;;  %223 = vst.msk [vmem:[#allocation2 + $0x60] sm:$0xff] %vm210_vm0, %v1825_v16  ;;  %v1420_v22 = vld [vmem:[%s1782_s10 + $0xe8] sm:$0x3]  ;;  %222 = vst.msk [vmem:[#allocation2 + $0x58] sm:$0xff] %vm210_vm0, %v1835_v20 }
  0x21   : > { %862 = vrot.lane.b32.xlu1 %v1805_v7, %s1675_s21  ;;  %v618_v18 = vsel %vm251_vm1, %v1802_v6, %v617_v12  ;;  %221 = vst.msk [vmem:[#allocation2 + $0x50] sm:$0xff] %vm210_vm0, %v1838_v21  ;;  %v1849_v23 = vld [vmem:[%s1782_s10 + $0x68] sm:$0xff]  ;;  %v1854_v24 = vsel %vm251_vm1, %v287_v15, %v1794_v3  ;;  %v393_v25 = vrot.slane %v1797_v5, 2  ;;  %v1858_v26 = vld [vmem:[%s1782_s10 + $0x60] sm:$0xff]  ;;  %v941_v27 = vrot.slane %v1805_v7, 1  ;;  %v1868_v30 = vld [vmem:[%s1782_s10 + $0x50] sm:$0xff] }
  0x22   : > { %220 = vst.msk [vmem:[#allocation2 + $0x48] sm:$0xff] %vm210_vm0, %v1849_v23  ;;  %v723_v28 = vsel %vm357_vm2, %v1830_v17, %v722_v19  ;;  %v943_v29 = vrot.slane %v1420_v22, 1  ;;  %219 = vst.msk [vmem:[#allocation2 + $0x40] sm:$0xff] %vm210_vm0, %v1858_v26  ;;  %v1873_v31 = vld [vmem:[%s1782_s10 + $0x48] sm:$0xff]  ;;  %v1046_v33 = vrot.slane %v1805_v7, 2  ;;  %v1886_v34 = vld [vmem:[%s1782_s10 + $0xc0] sm:$0xff] }
  0x23   : > { %218 = vst.msk [vmem:[#allocation2 + $0x38] sm:$0xff] %vm210_vm0, %v1868_v30  ;;  %217 = vst.msk [vmem:[#allocation2 + $0x30] sm:$0xff] %vm210_vm0, %v1873_v31  ;;  %v1882_v32 = vsel %vm357_vm2, %v393_v25, %v1808_v8  ;;  %v1048_v36 = vrot.slane %v1420_v22, 2  ;;  %v614_v37 = vrot.slane %v1886_v34, 1  ;;  %v719_v38 = vrot.slane %v1886_v34, 2  ;;  %v1418_v45 = vld [vmem:[%s1782_s10 + $0xd8] sm:$0xff] }
  0x24   : > { %428 = vrot.lane.b32.xlu0 %v397_v14, %s1676_s24  ;;  %v944_v35 = vsel %vm251_vm1, %v941_v27, %v943_v29  ;;  %v206_v40 = vld [vmem:[%s1782_s10 + $0xa0] sm:$0x3]  ;;  %v1904_v42 = vrot.slane %v1817_v13, 1  ;;  %v1914_v46 = vld [vmem:[%s1782_s10 + $0x38] sm:$0xff]  ;;  %v1921_v48 = vrot.slane %v1817_v13, 2  ;;  %v940_v50 = vrot.slane %v1418_v45, 1 }
  0x25   : > { %649 = vrot.lane.b32.xlu1 %v618_v18, %s1677_s27  ;;  %v1049_v39 = vsel %vm357_vm2, %v1046_v33, %v1048_v36  ;;  %v1900_v41 = vsel %vm251_vm1, %v614_v37, %v1802_v6  ;;  %v285_v43 = vrot.slane %v206_v40, 1  ;;  %v1908_v44 = vsel %vm357_vm2, %v719_v38, %v1830_v17  ;;  %216 = vst.msk [vmem:[#allocation2 + $0x28] sm:$0xff] %vm210_vm0, %v1914_v46  ;;  %v1391_v55 = vld [vmem:[%s1782_s10 + $0xb8] sm:$0x3]  ;;  %v1417_v62 = vld [vmem:[%s1782_s10 + $0xd0] sm:$0x3] }
  0x26   : > { %v391_v49 = vrot.slane %v206_v40, 2  ;;  %v1045_v53 = vrot.slane %v1418_v45, 2  ;;  %v942_v54 = vsel %vm251_vm1, %v940_v50, %v941_v27  ;;  %v612_v56 = vrot.slane %v1391_v55, 1  ;;  %v1946_v63 = vld [vmem:[%s1782_s10 + $0x30] sm:$0xff]  ;;  %v203_v14 = vld [vmem:[%s1782_s10 + $0x88] sm:$0x3] }
  0x27   : > { %v286_v47 = vsel %vm251_vm1, %v1904_v42, %v285_v43  ;;  %v717_v58 = vrot.slane %v1391_v55, 2  ;;  %v282_v60 = vrot.slane %v1825_v16, 1  ;;  %v388_v4 = vrot.slane %v1825_v16, 2  ;;  %215 = vst.msk [vmem:[#allocation2 + $0x20] sm:$0xff] %vm210_vm0, %v1946_v63  ;;  %v1981_v15 = vld [vmem:[%s1782_s10 + $0x20] sm:$0xff]  ;;  %v2013_v36 = vld [vmem:[%s1782_s10 + $0x18] sm:$0xff] }
  0x28   : > { %320 = vrot.lane.b32.xlu0 %v1854_v24, %s1674_s20  ;;  %v392_v52 = vsel %vm357_vm2, %v1921_v48, %v391_v49  ;;  %v1047_v57 = vsel %vm357_vm2, %v1045_v53, %v1046_v33  ;;  %v613_v59 = vsel %vm251_vm1, %v1794_v3, %v612_v56  ;;  %v938_v7 = vrot.slane %v1417_v62, 1  ;;  %214 = vst.msk [vmem:[#allocation2 + $0x18] sm:$0xff] %vm210_vm0, %v1981_v15  ;;  %v1388_v25 = vld [vmem:[%s1782_s10 + $0xa0] sm:$0x3]  ;;  %v1385_v53 = vld [vmem:[%s1782_s10 + $0x88] sm:$0x3] }
  0x29   : > { %754 = vrot.lane.b32.xlu1 %v723_v28, %s1678_s28  ;;  %v718_v61 = vsel %vm357_vm2, %v1808_v8, %v717_v58  ;;  %v1950_v2 = vsel %vm251_vm1, %v282_v60, %v1904_v42  ;;  %v1960_v9 = vsel %vm357_vm2, %v388_v4, %v1921_v48  ;;  %v1043_v11 = vrot.slane %v1417_v62, 2  ;;  %213 = vst.msk [vmem:[#allocation2 + $0x10] sm:$0xff] %vm210_vm0, %v2013_v36  ;;  %v1411_v58 = vld [vmem:[%s1782_s10 + $0xa0] sm:$0x3] }
  0x2a   : > { %v939_v10 = vsel %vm251_vm1, %v1802_v6, %v938_v7  ;;  %v280_v6 = vrot.slane %v203_v14, 1  ;;  %v386_v19 = vrot.slane %v203_v14, 2  ;;  %v607_v27 = vrot.slane %v1388_v25, 1 }
  0x2b   : > { %v1044_v12 = vsel %vm357_vm2, %v1830_v17, %v1043_v11  ;;  %v1988_v17 = vrot.slane %v1835_v20, 2  ;;  %v712_v28 = vrot.slane %v1388_v25, 2  ;;  %v277_v33 = vrot.slane %v1838_v21, 1 }
  0x2c   : > { %426 = vrot.lane.b32.xlu0 %v1882_v32, %s1676_s24  ;;  %v608_v29 = vsel %vm251_vm1, %v1904_v42, %v607_v27  ;;  %v383_v38 = vrot.slane %v1838_v21, 2  ;;  %v707_v55 = vrot.slane %v1385_v53, 2  ;;  %v378_v60 = vrot.slane %v1858_v26, 2 }
  0x2d   : > { %975 = vrot.lane.b32.xlu1 %v944_v35, %s1679_s29  ;;  %v387_v22 = vsel %vm357_vm2, %v1988_v17, %v386_v19  ;;  %v1414_v35 = vld [vmem:[%s1782_s10 + $0xb8] sm:$0x3]  ;;  %v928_v62 = vrot.slane %v1411_v58, 1  ;;  %v1033_v14 = vrot.slane %v1411_v58, 2 }
  0x2e   : > { %v2027_v40 = vsel %vm357_vm2, %v383_v38, %v1988_v17  ;;  %v1038_v43 = vrot.slane %v1414_v35, 2 }
  0x30   : > { %534 = vrot.lane.b32.xlu0 %v1886_v34, %s1673_s11 }
  0x31   : > { %1080 = vrot.lane.b32.xlu1 %v1049_v39, %s1680_s4  ;;  %v933_v39 = vrot.slane %v1414_v35, 1 }
  0x34   : > { %647 = vrot.lane.b32.xlu0 %v1900_v41, %s1677_s27 }
  0x35   : > { %752 = vrot.lane.b32.xlu1 %v1908_v44, %s1678_s28 }
  0x38   : > { %318 = vrot.lane.b32.xlu0 %v286_v47, %s1674_s20  ;;  %v2048_v47 = vld [vmem:[%s1782_s10 + $0x8] sm:$0xff] }
  0x39   : > { %860 = vrot.lane.b32.xlu1 %v1418_v45, %s1675_s21  ;;  %v200_v45 = vld [vmem:[%s1782_s10 + $0x70] sm:$0x3]  ;;  %212 = vst.msk [vmem:[#allocation2 + $0x8] sm:$0xff] %vm210_vm0, %v2048_v47 }
  0x3a   : > { %v381_v50 = vrot.slane %v200_v45, 2 }
  0x3c   : > { %424 = vrot.lane.b32.xlu0 %v392_v52, %s1676_s24 }
  0x3d   : > { %973 = vrot.lane.b32.xlu1 %v942_v54, %s1679_s29  ;;  %v602_v54 = vrot.slane %v1385_v53, 1  ;;  %v1408_v53 = vld [vmem:[%s1782_s10 + $0x88] sm:$0x3] }
  0x40   : > { %532 = vrot.lane.b32.xlu0 %v1788_v1, %s1673_s11 }
  0x41   : > { %1078 = vrot.lane.b32.xlu1 %v1047_v57, %s1680_s4  ;;  %v272_v57 = vrot.slane %v1858_v26, 1 }
  0x44   : > { %645 = vrot.lane.b32.xlu0 %v613_v59, %s1677_s27 }
  0x45   : > { %750 = vrot.lane.b32.xlu1 %v718_v61, %s1678_s28  ;;  %v253_v61 = vrot.slane %v2048_v47, 1 }
  0x48   : > { %316 = vrot.lane.b32.xlu0 %v1950_v2, %s1674_s20 }
  0x49   : > { %858 = vrot.lane.b32.xlu1 %v1785_v0, %s1675_s21  ;;  %v1976_v0 = vrot.slane %v1835_v20, 1 }
  0x4b   : > { %v281_v18 = vsel %vm251_vm1, %v1976_v0, %v280_v6  ;;  %v2017_v37 = vsel %vm251_vm1, %v277_v33, %v1976_v0  ;;  %v603_v56 = vsel %vm251_vm1, %v1976_v0, %v602_v54 }
  0x4c   : > { %422 = vrot.lane.b32.xlu0 %v1960_v9, %s1676_s24 }
  0x4d   : > { %971 = vrot.lane.b32.xlu1 %v939_v10, %s1679_s29  ;;  %v359_v10 = vrot.slane %v2048_v47, 2 }
  0x50   : > { %530 = vrot.lane.b32.xlu0 %v1797_v5, %s1673_s11 }
  0x51   : > { %1076 = vrot.lane.b32.xlu1 %v1044_v12, %s1680_s4  ;;  %v929_v12 = vsel %vm251_vm1, %v1904_v42, %v928_v62  ;;  %v2119_v42 = vrot.slane %v1868_v30, 1 }
  0x54   : > { %643 = vrot.lane.b32.xlu0 %v1854_v24, %s1677_s27 }
  0x55   : > { %748 = vrot.lane.b32.xlu1 %v1882_v32, %s1678_s28 }
  0x58   : > { %314 = vrot.lane.b32.xlu0 %v281_v18, %s1674_s20  ;;  %v197_v18 = vld [vmem:[%s1782_s10 + $0x58] sm:$0x3] }
  0x59   : > { %856 = vrot.lane.b32.xlu1 %v1886_v34, %s1675_s21  ;;  %v713_v34 = vsel %vm357_vm2, %v1921_v48, %v712_v28  ;;  %v2129_v28 = vrot.slane %v1868_v30, 2 }
  0x5c   : > { %420 = vrot.lane.b32.xlu0 %v387_v22, %s1676_s24  ;;  %v270_v22 = vrot.slane %v197_v18, 1 }
  0x5d   : > { %969 = vrot.lane.b32.xlu1 %v1900_v41, %s1679_s29  ;;  %v934_v41 = vsel %vm251_vm1, %v1794_v3, %v933_v39  ;;  %v275_v3 = vrot.slane %v200_v45, 1  ;;  %v1382_v39 = vld [vmem:[%s1782_s10 + $0x70] sm:$0x3] }
  0x60   : > { %528 = vrot.lane.b32.xlu0 %v1817_v13, %s1673_s11 }
  0x61   : > { %1074 = vrot.lane.b32.xlu1 %v1908_v44, %s1680_s4  ;;  %v1039_v44 = vsel %vm357_vm2, %v1808_v8, %v1038_v43  ;;  %v2055_v8 = vrot.slane %v1849_v23, 2  ;;  %v597_v43 = vrot.slane %v1382_v39, 1 }
  0x63   : > { %v382_v52 = vsel %vm357_vm2, %v2055_v8, %v381_v50  ;;  %v2097_v7 = vsel %vm357_vm2, %v378_v60, %v2055_v8  ;;  %v1028_v60 = vrot.slane %v1408_v53, 2 }
  0x64   : > { %641 = vrot.lane.b32.xlu0 %v608_v29, %s1677_s27  ;;  %v376_v29 = vrot.slane %v197_v18, 2 }
  0x65   : > { %746 = vrot.lane.b32.xlu1 %v713_v34, %s1678_s28 }
  0x66   : > { %v377_v35 = vsel %vm357_vm2, %v2129_v28, %v376_v29 }
  0x68   : > { %312 = vrot.lane.b32.xlu0 %v2017_v37, %s1674_s20 }
  0x69   : > { %854 = vrot.lane.b32.xlu1 %v1788_v1, %s1675_s21  ;;  %v2043_v1 = vrot.slane %v1849_v23, 1 }
  0x6b   : > { %v276_v49 = vsel %vm251_vm1, %v2043_v1, %v275_v3  ;;  %v2082_v59 = vsel %vm251_vm1, %v272_v57, %v2043_v1  ;;  %v598_v3 = vsel %vm251_vm1, %v2043_v1, %v597_v43 }
  0x6c   : > { %418 = vrot.lane.b32.xlu0 %v2027_v40, %s1676_s24 }
  0x6d   : > { %967 = vrot.lane.b32.xlu1 %v934_v41, %s1679_s29 }
  0x70   : > { %526 = vrot.lane.b32.xlu0 %v1825_v16, %s1673_s11 }
  0x71   : > { %1072 = vrot.lane.b32.xlu1 %v1039_v44, %s1680_s4 }
  0x74   : > { %639 = vrot.lane.b32.xlu0 %v1950_v2, %s1677_s27 }
  0x75   : > { %744 = vrot.lane.b32.xlu1 %v1960_v9, %s1678_s28 }
  0x78   : > { %310 = vrot.lane.b32.xlu0 %v276_v49, %s1674_s20 }
  0x79   : > { %852 = vrot.lane.b32.xlu1 %v1797_v5, %s1675_s21  ;;  %v708_v5 = vsel %vm357_vm2, %v1988_v17, %v707_v55 }
  0x7c   : > { %416 = vrot.lane.b32.xlu0 %v382_v52, %s1676_s24 }
  0x7d   : > { %965 = vrot.lane.b32.xlu1 %v1854_v24, %s1679_s29  ;;  %v186_v24 = vld [vmem:[%s1782_s10] sm:$0xff] }
  0x7e   : > { %211 = vst.msk [vmem:[#allocation2] sm:$0xff] %vm210_vm0, %v186_v24  ;;  %v358_v11 = vrot.slane %v186_v24, 2 }
  0x80   : > { %524 = vrot.lane.b32.xlu0 %v1835_v20, %s1673_s11  ;;  %v2107_v6 = vsel %vm357_vm2, %v358_v11, %v359_v10  ;;  %v194_v11 = vld [vmem:[%s1782_s10 + $0x40] sm:$0x3] }
  0x81   : > { %1070 = vrot.lane.b32.xlu1 %v1882_v32, %s1680_s4  ;;  %v252_v32 = vrot.slane %v186_v24, 1 }
  0x83   : > { %v2091_v4 = vsel %vm251_vm1, %v252_v32, %v253_v61 }
  0x84   : > { %637 = vrot.lane.b32.xlu0 %v603_v56, %s1677_s27  ;;  %v923_v56 = vrot.slane %v1408_v53, 1 }
  0x85   : > { %742 = vrot.lane.b32.xlu1 %v708_v5, %s1678_s28 }
  0x86   : > { %v924_v24 = vsel %vm251_vm1, %v1976_v0, %v923_v56  ;;  %v1029_v0 = vsel %vm357_vm2, %v1988_v17, %v1028_v60  ;;  %v191_v60 = vld [vmem:[%s1782_s10 + $0x28] sm:$0x3] }
  0x88   : > { %308 = vrot.lane.b32.xlu0 %v2082_v59, %s1674_s20 }
  0x89   : > { %850 = vrot.lane.b32.xlu1 %v1817_v13, %s1675_s21  ;;  %v1034_v13 = vsel %vm357_vm2, %v1921_v48, %v1033_v14  ;;  %v271_v48 = vsel %vm251_vm1, %v2119_v42, %v270_v22  ;;  %v2195_v14 = vrot.slane %v1914_v46, 1  ;;  %v2206_v22 = vrot.slane %v1914_v46, 2 }
  0x8c   : > { %414 = vrot.lane.b32.xlu0 %v2097_v7, %s1676_s24 }
  0x8d   : > { %963 = vrot.lane.b32.xlu1 %v929_v12, %s1679_s29 }
  0x8f   : > { %v537_v19 = vpop.permute.xlu1 %536 }
  0x90   : > { %522 = vrot.lane.b32.xlu0 %v1838_v21, %s1673_s11 }
  0x91   : > { %1068 = vrot.lane.b32.xlu1 %v1034_v13, %s1680_s4  ;;  %v265_v13 = vrot.slane %v194_v11, 1 }
  0x92   : > { %v323_v25 = vpop.permute.xlu0 %322 }
  0x93   : > { %356 = vst.msk [vmem:[#allocation2 + $0x78] sm:$0xff] %vm340_vm3, %v323_v25  ;;  %v863_v27 = vpop.permute.xlu1 %862  ;;  %v371_v25 = vrot.slane %v194_v11, 2 }
  0x94   : > { %635 = vrot.lane.b32.xlu0 %v2017_v37, %s1677_s27 }
  0x95   : > { %740 = vrot.lane.b32.xlu1 %v2027_v40, %s1678_s28  ;;  %v372_v29 = vsel %vm357_vm2, %v2206_v22, %v371_v25 }
  0x96   : > { %v429_v33 = vpop.permute.xlu0 %428 }
  0x97   : > { %462 = vst.msk [vmem:[#allocation2 + $0x78] sm:$0xff] %vm446_vm4, %v429_v33  ;;  %v650_v34 = vpop.permute.xlu1 %649 }
  0x98   : > { %570 = vst.msk [vmem:[#allocation2 + $0x78] sm:$0xff] %vm554_vm5, %v537_v19  ;;  %306 = vrot.lane.b32.xlu0 %v271_v48, %s1674_s20  ;;  %v266_v19 = vsel %vm251_vm1, %v2195_v14, %v265_v13  ;;  %v366_v13 = vrot.slane %v191_v60, 2 }
  0x99   : > { %683 = vst.msk [vmem:[#allocation2 + $0x78] sm:$0xff] %vm667_vm6, %v650_v34  ;;  %848 = vrot.lane.b32.xlu1 %v1825_v16, %s1675_s21  ;;  %v702_v16 = vrot.slane %v1382_v39, 2  ;;  %v1379_v34 = vld [vmem:[%s1782_s10 + $0x58] sm:$0x3] }
  0x9a   : > { %v321_v38 = vpop.permute.xlu0 %320  ;;  %v592_v39 = vrot.slane %v1379_v34, 1 }
  0x9b   : > { %355 = vst.msk [vmem:[#allocation2 + $0x70] sm:$0xff] %vm340_vm3, %v321_v38  ;;  %v755_v41 = vpop.permute.xlu1 %754  ;;  %v703_v50 = vsel %vm357_vm2, %v2055_v8, %v702_v16 }
  0x9c   : > { %788 = vst.msk [vmem:[#allocation2 + $0x78] sm:$0xff] %vm772_vm7, %v755_v41  ;;  %412 = vrot.lane.b32.xlu0 %v377_v35, %s1676_s24  ;;  %v697_v41 = vrot.slane %v1379_v34, 2 }
  0x9d   : > { %961 = vrot.lane.b32.xlu1 %v1950_v2, %s1679_s29  ;;  %896 = vst.msk [vmem:[#allocation2 + $0x78] sm:$0xff] %vm880_vm8, %v863_v27  ;;  %v267_v2 = vrot.slane %v1873_v31, 1 }
  0x9e   : > { %v427_v44 = vpop.permute.xlu0 %426 }
  0x9f   : > { %461 = vst.msk [vmem:[#allocation2 + $0x70] sm:$0xff] %vm446_vm4, %v427_v44  ;;  %v976_v45 = vpop.permute.xlu1 %975  ;;  %v2163_v54 = vsel %vm251_vm1, %v267_v2, %v2119_v42  ;;  %v593_v44 = vsel %vm251_vm1, %v2119_v42, %v592_v39  ;;  %v1405_v2 = vld [vmem:[%s1782_s10 + $0x70] sm:$0x3] }
  0xa0   : > { %520 = vrot.lane.b32.xlu0 %v1849_v23, %s1673_s11  ;;  %1009 = vst.msk [vmem:[#allocation2 + $0x78] sm:$0xff] %vm993_vm9, %v976_v45  ;;  %v698_v45 = vsel %vm357_vm2, %v2129_v28, %v697_v41 }
  0xa1   : > { %1066 = vrot.lane.b32.xlu1 %v1960_v9, %s1680_s4  ;;  %v373_v9 = vrot.slane %v1873_v31, 2 }
  0xa2   : > { %v535_v49 = vpop.permute.xlu0 %534 }
  0xa3   : > { %569 = vst.msk [vmem:[#allocation2 + $0x70] sm:$0xff] %vm554_vm5, %v535_v49  ;;  %v1081_v52 = vpop.permute.xlu1 %1080  ;;  %v2173_v5 = vsel %vm357_vm2, %v373_v9, %v2129_v28 }
  0xa4   : > { %633 = vrot.lane.b32.xlu0 %v598_v3, %s1677_s27  ;;  %1114 = vst.msk [vmem:[#allocation2 + $0x78] sm:$0xff] %vm1098_vm10, %v1081_v52  ;;  %v918_v52 = vrot.slane %v1405_v2, 1 }
  0xa5   : > { %738 = vrot.lane.b32.xlu1 %v703_v50, %s1678_s28 }
  0xa6   : > { %v648_v55 = vpop.permute.xlu0 %647  ;;  %v919_v56 = vsel %vm251_vm1, %v2043_v1, %v918_v52 }
  0xa7   : > { %682 = vst.msk [vmem:[#allocation2 + $0x70] sm:$0xff] %vm667_vm6, %v648_v55  ;;  %v753_v57 = vpop.permute.xlu1 %752 }
  0xa8   : > { %304 = vrot.lane.b32.xlu0 %v2163_v54, %s1674_s20  ;;  %787 = vst.msk [vmem:[#allocation2 + $0x70] sm:$0xff] %vm772_vm7, %v753_v57  ;;  %v1023_v57 = vrot.slane %v1405_v2, 2 }
  0xa9   : > { %846 = vrot.lane.b32.xlu1 %v1835_v20, %s1675_s21 }
  0xaa   : > { %v319_v58 = vpop.permute.xlu0 %318  ;;  %v1024_v1 = vsel %vm357_vm2, %v2055_v8, %v1023_v57 }
  0xab   : > { %354 = vst.msk [vmem:[#allocation2 + $0x68] sm:$0xff] %vm340_vm3, %v319_v58  ;;  %v861_v32 = vpop.permute.xlu1 %860  ;;  %v1131_v62 = vld [vmem:[#allocation2 + $0x78] sm:$0xff] }
  0xac   : > { %410 = vrot.lane.b32.xlu0 %v2173_v5, %s1676_s24  ;;  %895 = vst.msk [vmem:[#allocation2 + $0x70] sm:$0xff] %vm880_vm8, %v861_v32  ;;  %1461 = vmatpush3.xpose.msk.msra.mxu0 %vm1138_vm11, %v1131_v62  ;;  %v2272_v62 = vrot.slane %v1981_v15, 1 }
  0xad   : > { %959 = vrot.lane.b32.xlu1 %v924_v24, %s1679_s29  ;;  %1462 = vmatprep.subr.mxu0 %v1681_v51 }
  0xae   : > { %v425_v20 = vpop.permute.xlu0 %424 }
  0xaf   : > { %460 = vst.msk [vmem:[#allocation2 + $0x68] sm:$0xff] %vm446_vm4, %v425_v20  ;;  %v974_v12 = vpop.permute.xlu1 %973  ;;  %v260_v20 = vrot.slane %v191_v60, 1 }
  0xb0   : > { %518 = vrot.lane.b32.xlu0 %v1858_v26, %s1673_s11  ;;  %1008 = vst.msk [vmem:[#allocation2 + $0x70] sm:$0xff] %vm993_vm9, %v974_v12  ;;  %v2283_v12 = vrot.slane %v1981_v15, 2 }
  0xb1   : > { %1064 = vrot.lane.b32.xlu1 %v1029_v0, %s1680_s4  ;;  %v261_v11 = vsel %vm251_vm1, %v2272_v62, %v260_v20  ;;  %v1373_v20 = vld [vmem:[%s1782_s10 + $0x28] sm:$0x3] }
  0xb2   : > { %v533_v18 = vpop.permute.xlu0 %532  ;;  %v582_v47 = vrot.slane %v1373_v20, 1 }
  0xb3   : > { %568 = vst.msk [vmem:[#allocation2 + $0x68] sm:$0xff] %vm554_vm5, %v533_v18  ;;  %v1079_v17 = vpop.permute.xlu1 %1078 }
  0xb4   : > { %631 = vrot.lane.b32.xlu0 %v2082_v59, %s1677_s27  ;;  %1113 = vst.msk [vmem:[#allocation2 + $0x70] sm:$0xff] %vm1098_vm10, %v1079_v17 }
  0xb5   : > { %736 = vrot.lane.b32.xlu1 %v2097_v7, %s1678_s28 }
  0xb6   : > { %v646_v27 = vpop.permute.xlu0 %645 }
  0xb7   : > { %681 = vst.msk [vmem:[#allocation2 + $0x68] sm:$0xff] %vm667_vm6, %v646_v27  ;;  %v751_v48 = vpop.permute.xlu1 %750  ;;  %v1376_v27 = vld [vmem:[%s1782_s10 + $0x40] sm:$0x3] }
  0xb8   : > { %302 = vrot.lane.b32.xlu0 %v266_v19, %s1674_s20  ;;  %786 = vst.msk [vmem:[#allocation2 + $0x68] sm:$0xff] %vm772_vm7, %v751_v48  ;;  %v367_v19 = vsel %vm357_vm2, %v2283_v12, %v366_v13  ;;  %v692_v34 = vrot.slane %v1376_v27, 2  ;;  %v583_v13 = vsel %vm251_vm1, %v2272_v62, %v582_v47 }
  0xb9   : > { %844 = vrot.lane.b32.xlu1 %v1838_v21, %s1675_s21 }
  0xba   : > { %v317_v33 = vpop.permute.xlu0 %316 }
  0xbb   : > { %353 = vst.msk [vmem:[#allocation2 + $0x60] sm:$0xff] %vm340_vm3, %v317_v33  ;;  %v859_v35 = vpop.permute.xlu1 %858  ;;  %v1130_v38 = vld [vmem:[#allocation2 + $0x70] sm:$0xff]  ;;  %v587_v33 = vrot.slane %v1376_v27, 1 }
  0xbc   : > { %408 = vrot.lane.b32.xlu0 %v372_v29, %s1676_s24  ;;  %894 = vst.msk [vmem:[#allocation2 + $0x68] sm:$0xff] %vm880_vm8, %v859_v35  ;;  %1463 = vmatpush3.xpose.msk.msra.mxu0 %vm1138_vm11, %v1130_v38 }
  0xbd   : > { %957 = vrot.lane.b32.xlu1 %v2017_v37, %s1679_s29  ;;  %1464 = vmatprep.subr.mxu0 %v1681_v51  ;;  %v262_v37 = vrot.slane %v1946_v63, 1  ;;  %v588_v38 = vsel %vm251_vm1, %v2195_v14, %v587_v33 }
  0xbe   : > { %v423_v21 = vpop.permute.xlu0 %422 }
  0xbf   : > { %459 = vst.msk [vmem:[#allocation2 + $0x60] sm:$0xff] %vm446_vm4, %v423_v21  ;;  %v972_v43 = vpop.permute.xlu1 %971  ;;  %v2240_v49 = vsel %vm251_vm1, %v262_v37, %v2195_v14  ;;  %v693_v21 = vsel %vm357_vm2, %v2206_v22, %v692_v34 }
  0xc0   : > { %516 = vrot.lane.b32.xlu0 %v1868_v30, %s1673_s11  ;;  %1007 = vst.msk [vmem:[#allocation2 + $0x68] sm:$0xff] %vm993_vm9, %v972_v43  ;;  %v1402_v43 = vld [vmem:[%s1782_s10 + $0x58] sm:$0x3] }
  0xc1   : > { %1062 = vrot.lane.b32.xlu1 %v2027_v40, %s1680_s4  ;;  %v368_v40 = vrot.slane %v1946_v63, 2 }
  0xc2   : > { %v531_v16 = vpop.permute.xlu0 %530 }
  0xc3   : > { %567 = vst.msk [vmem:[#allocation2 + $0x60] sm:$0xff] %vm554_vm5, %v531_v16  ;;  %v1077_v3 = vpop.permute.xlu1 %1076  ;;  %v2250_v9 = vsel %vm357_vm2, %v368_v40, %v2206_v22  ;;  %v913_v16 = vrot.slane %v1402_v43, 1 }
  0xc4   : > { %629 = vrot.lane.b32.xlu0 %v593_v44, %s1677_s27  ;;  %1112 = vst.msk [vmem:[#allocation2 + $0x68] sm:$0xff] %vm1098_vm10, %v1077_v3 }
  0xc5   : > { %734 = vrot.lane.b32.xlu1 %v698_v45, %s1678_s28  ;;  %v914_v40 = vsel %vm251_vm1, %v2119_v42, %v913_v16 }
  0xc6   : > { %v644_v50 = vpop.permute.xlu0 %643 }
  0xc7   : > { %680 = vst.msk [vmem:[#allocation2 + $0x60] sm:$0xff] %vm667_vm6, %v644_v50  ;;  %v749_v53 = vpop.permute.xlu1 %748  ;;  %v1018_v50 = vrot.slane %v1402_v43, 2 }
  0xc8   : > { %300 = vrot.lane.b32.xlu0 %v2240_v49, %s1674_s20  ;;  %785 = vst.msk [vmem:[#allocation2 + $0x60] sm:$0xff] %vm772_vm7, %v749_v53 }
  0xc9   : > { %842 = vrot.lane.b32.xlu1 %v1849_v23, %s1675_s21  ;;  %v1019_v42 = vsel %vm357_vm2, %v2129_v28, %v1018_v50 }
  0xca   : > { %v315_v55 = vpop.permute.xlu0 %314 }
  0xcb   : > { %352 = vst.msk [vmem:[#allocation2 + $0x58] sm:$0xff] %vm340_vm3, %v315_v55  ;;  %v857_v58 = vpop.permute.xlu1 %856  ;;  %v1129_v24 = vld [vmem:[#allocation2 + $0x68] sm:$0xff]  ;;  %v188_v55 = vld [vmem:[%s1782_s10 + $0x10] sm:$0x3] }
  0xcc   : > { %406 = vrot.lane.b32.xlu0 %v2250_v9, %s1676_s24  ;;  %893 = vst.msk [vmem:[#allocation2 + $0x60] sm:$0xff] %vm880_vm8, %v857_v58  ;;  %1465 = vmatpush3.xpose.msk.msra.mxu0 %vm1138_vm11, %v1129_v24  ;;  %v255_v57 = vrot.slane %v188_v55, 1 }
  0xcd   : > { %955 = vrot.lane.b32.xlu1 %v919_v56, %s1679_s29  ;;  %1466 = vmatprep.subr.mxu0 %v1681_v51 }
  0xce   : > { %v421_v23 = vpop.permute.xlu0 %420  ;;  %v256_v28 = vsel %vm251_vm1, %v253_v61, %v255_v57 }
  0xcf   : > { %458 = vst.msk [vmem:[#allocation2 + $0x58] sm:$0xff] %vm446_vm4, %v421_v23  ;;  %v970_v32 = vpop.permute.xlu1 %969  ;;  %v361_v23 = vrot.slane %v188_v55, 2 }
  0xd0   : > { %514 = vrot.lane.b32.xlu0 %v1873_v31, %s1673_s11  ;;  %1006 = vst.msk [vmem:[#allocation2 + $0x60] sm:$0xff] %vm993_vm9, %v970_v32 }
  0xd1   : > { %1060 = vrot.lane.b32.xlu1 %v1024_v1, %s1680_s4  ;;  %v362_v32 = vsel %vm357_vm2, %v359_v10, %v361_v23  ;;  %v687_v10 = vrot.slane %v1373_v20, 2 }
  0xd2   : > { %v529_v0 = vpop.permute.xlu0 %528 }
  0xd3   : > { %566 = vst.msk [vmem:[#allocation2 + $0x58] sm:$0xff] %vm554_vm5, %v529_v0  ;;  %v1075_v8 = vpop.permute.xlu1 %1074 }
  0xd4   : > { %627 = vrot.lane.b32.xlu0 %v2163_v54, %s1677_s27  ;;  %1111 = vst.msk [vmem:[#allocation2 + $0x60] sm:$0xff] %vm1098_vm10, %v1075_v8 }
  0xd5   : > { %732 = vrot.lane.b32.xlu1 %v2173_v5, %s1678_s28 }
  0xd6   : > { %v642_v18 = vpop.permute.xlu0 %641 }
  0xd7   : > { %679 = vst.msk [vmem:[#allocation2 + $0x58] sm:$0xff] %vm667_vm6, %v642_v18  ;;  %v747_v17 = vpop.permute.xlu1 %746  ;;  %v688_v18 = vsel %vm357_vm2, %v2283_v12, %v687_v10 }
  0xd8   : > { %298 = vrot.lane.b32.xlu0 %v261_v11, %s1674_s20  ;;  %784 = vst.msk [vmem:[#allocation2 + $0x58] sm:$0xff] %vm772_vm7, %v747_v17 }
  0xd9   : > { %840 = vrot.lane.b32.xlu1 %v1858_v26, %s1675_s21 }
  0xda   : > { %v313_v25 = vpop.permute.xlu0 %312 }
  0xdb   : > { %351 = vst.msk [vmem:[#allocation2 + $0x50] sm:$0xff] %vm340_vm3, %v313_v25  ;;  %v855_v48 = vpop.permute.xlu1 %854  ;;  %v1128_v29 = vld [vmem:[#allocation2 + $0x60] sm:$0xff] }
  0xdc   : > { %404 = vrot.lane.b32.xlu0 %v367_v19, %s1676_s24  ;;  %892 = vst.msk [vmem:[#allocation2 + $0x58] sm:$0xff] %vm880_vm8, %v855_v48  ;;  %1467 = vmatpush3.xpose.msk.msra.mxu0 %vm1138_vm11, %v1128_v29  ;;  %v1399_v19 = vld [vmem:[%s1782_s10 + $0x40] sm:$0x3]  ;;  %s1365_s10 = sshll.u32 %s175_s9, 3 }
  0xdd   : > { %953 = vrot.lane.b32.xlu1 %v2082_v59, %s1679_s29  ;;  %1468 = vmatprep.subr.mxu0 %v1681_v51  ;;  %v257_v59 = vrot.slane %v2013_v36, 1  ;;  %v908_v25 = vrot.slane %v1399_v19, 1  ;;  %v1013_v27 = vrot.slane %v1399_v19, 2 }
  0xde   : > { %v419_v26 = vpop.permute.xlu0 %418 }
  0xdf   : > { %457 = vst.msk [vmem:[#allocation2 + $0x50] sm:$0xff] %vm446_vm4, %v419_v26  ;;  %v968_v35 = vpop.permute.xlu1 %967  ;;  %v2317_v44 = vsel %vm251_vm1, %v257_v59, %v2272_v62 }
  0xe0   : > { %512 = vrot.lane.b32.xlu0 %v1914_v46, %s1673_s11  ;;  %1005 = vst.msk [vmem:[#allocation2 + $0x58] sm:$0xff] %vm993_vm9, %v968_v35  ;;  %v1683_v35 = vmov 0  }
  0xe1   : > { %1058 = vrot.lane.b32.xlu1 %v2097_v7, %s1680_s4  ;;  %v363_v7 = vrot.slane %v2013_v36, 2  ;;  %1578 = vset.pattern.permute.xlu0 %v1683_v35 }
  0xe2   : > { %v527_v39 = vpop.permute.xlu0 %526 }
  0xe3   : > { %565 = vst.msk [vmem:[#allocation2 + $0x50] sm:$0xff] %vm554_vm5, %v527_v39  ;;  %v1073_v41 = vpop.permute.xlu1 %1072  ;;  %v2327_v3 = vsel %vm357_vm2, %v363_v7, %v2283_v12  ;;  %v909_v12 = vsel %vm251_vm1, %v2195_v14, %v908_v25 }
  0xe4   : > { %625 = vrot.lane.b32.xlu0 %v588_v38, %s1677_s27  ;;  %1110 = vst.msk [vmem:[#allocation2 + $0x58] sm:$0xff] %vm1098_vm10, %v1073_v41 }
  0xe5   : > { %730 = vrot.lane.b32.xlu1 %v693_v21, %s1678_s28 }
  0xe6   : > { %v640_v37 = vpop.permute.xlu0 %639 }
  0xe7   : > { %678 = vst.msk [vmem:[#allocation2 + $0x50] sm:$0xff] %vm667_vm6, %v640_v37  ;;  %v745_v45 = vpop.permute.xlu1 %744 }
  0xe8   : > { %296 = vrot.lane.b32.xlu0 %v2317_v44, %s1674_s20  ;;  %783 = vst.msk [vmem:[#allocation2 + $0x50] sm:$0xff] %vm772_vm7, %v745_v45 }
  0xe9   : > { %838 = vrot.lane.b32.xlu1 %v1868_v30, %s1675_s21 }
  0xea   : > { %v311_v2 = vpop.permute.xlu0 %310 }
  0xeb   : > { %350 = vst.msk [vmem:[#allocation2 + $0x48] sm:$0xff] %vm340_vm3, %v311_v2  ;;  %v853_v52 = vpop.permute.xlu1 %852  ;;  %v1127_v53 = vld [vmem:[#allocation2 + $0x58] sm:$0xff] }
  0xec   : > { %402 = vrot.lane.b32.xlu0 %v2327_v3, %s1676_s24  ;;  %891 = vst.msk [vmem:[#allocation2 + $0x50] sm:$0xff] %vm880_vm8, %v853_v52  ;;  %1469 = vmatpush3.xpose.msk.msra.mxu0 %vm1138_vm11, %v1127_v53 }
  0xed   : > { %951 = vrot.lane.b32.xlu1 %v914_v40, %s1679_s29  ;;  %1470 = vmatprep.subr.mxu0 %v1681_v51 }
  0xee   : > { %v417_v30 = vpop.permute.xlu0 %416 }
  0xef   : > { %456 = vst.msk [vmem:[#allocation2 + $0x48] sm:$0xff] %vm446_vm4, %v417_v30  ;;  %v966_v56 = vpop.permute.xlu1 %965 }
  0xf0   : > { %510 = vrot.lane.b32.xlu0 %v1946_v63, %s1673_s11  ;;  %1004 = vst.msk [vmem:[#allocation2 + $0x50] sm:$0xff] %vm993_vm9, %v966_v56 }
  0xf1   : > { %1056 = vrot.lane.b32.xlu1 %v1019_v42, %s1680_s4 }
  0xf2   : > { %v525_v58 = vpop.permute.xlu0 %524 }
  0xf3   : > { %564 = vst.msk [vmem:[#allocation2 + $0x48] sm:$0xff] %vm554_vm5, %v525_v58  ;;  %v1071_v24 = vpop.permute.xlu1 %1070 }
  0xf4   : > { %623 = vrot.lane.b32.xlu0 %v2240_v49, %s1677_s27  ;;  %1109 = vst.msk [vmem:[#allocation2 + $0x50] sm:$0xff] %vm1098_vm10, %v1071_v24 }
  0xf5   : > { %728 = vrot.lane.b32.xlu1 %v2250_v9, %s1678_s28 }
  0xf6   : > { %v638_v1 = vpop.permute.xlu0 %637 }
  0xf7   : > { %677 = vst.msk [vmem:[#allocation2 + $0x48] sm:$0xff] %vm667_vm6, %v638_v1  ;;  %v743_v60 = vpop.permute.xlu1 %742 }
  0xf8   : > { %294 = vrot.lane.b32.xlu0 %v256_v28, %s1674_s20  ;;  %782 = vst.msk [vmem:[#allocation2 + $0x48] sm:$0xff] %vm772_vm7, %v743_v60 }
  0xf9   : > { %836 = vrot.lane.b32.xlu1 %v1873_v31, %s1675_s21 }
  0xfa   : > { %v309_v61 = vpop.permute.xlu0 %308 }
  0xfb   : > { %349 = vst.msk [vmem:[#allocation2 + $0x40] sm:$0xff] %vm340_vm3, %v309_v61  ;;  %v851_v0 = vpop.permute.xlu1 %850  ;;  %v1126_v8 = vld [vmem:[#allocation2 + $0x50] sm:$0xff] }
  0xfc   : > { %400 = vrot.lane.b32.xlu0 %v362_v32, %s1676_s24  ;;  %890 = vst.msk [vmem:[#allocation2 + $0x48] sm:$0xff] %vm880_vm8, %v851_v0  ;;  %1471 = vmatpush3.xpose.msk.msra.mxu0 %vm1138_vm11, %v1126_v8 }
  0xfd   : > { %949 = vrot.lane.b32.xlu1 %v2163_v54, %s1679_s29  ;;  %1472 = vmatprep.subr.mxu0 %v1681_v51 }
  0xfe   : > { %v415_v31 = vpop.permute.xlu0 %414 }
  0xff   : > { %455 = vst.msk [vmem:[#allocation2 + $0x40] sm:$0xff] %vm446_vm4, %v415_v31  ;;  %v964_v11 = vpop.permute.xlu1 %963 }
 0x100   : > { %508 = vrot.lane.b32.xlu0 %v1981_v15, %s1673_s11  ;;  %1003 = vst.msk [vmem:[#allocation2 + $0x48] sm:$0xff] %vm993_vm9, %v964_v11 }
 0x101   : > { %1054 = vrot.lane.b32.xlu1 %v2173_v5, %s1680_s4 }
 0x102   : > { %v523_v54 = vpop.permute.xlu0 %522 }
 0x103   : > { %563 = vst.msk [vmem:[#allocation2 + $0x40] sm:$0xff] %vm554_vm5, %v523_v54  ;;  %v1069_v17 = vpop.permute.xlu1 %1068 }
 0x104   : > { %621 = vrot.lane.b32.xlu0 %v583_v13, %s1677_s27  ;;  %1108 = vst.msk [vmem:[#allocation2 + $0x48] sm:$0xff] %vm1098_vm10, %v1069_v17 }
 0x105   : > { %726 = vrot.lane.b32.xlu1 %v688_v18, %s1678_s28 }
 0x106   : > { %v636_v15 = vpop.permute.xlu0 %635 }
 0x107   : > { %676 = vst.msk [vmem:[#allocation2 + $0x40] sm:$0xff] %vm667_vm6, %v636_v15  ;;  %v741_v62 = vpop.permute.xlu1 %740 }
 0x108   : > { %292 = vrot.lane.b32.xlu0 %v2091_v4, %s1674_s20  ;;  %781 = vst.msk [vmem:[#allocation2 + $0x40] sm:$0xff] %vm772_vm7, %v741_v62  ;;  %v1014_v4 = vsel %vm357_vm2, %v2206_v22, %v1013_v27 }
 0x109   : > { %834 = vrot.lane.b32.xlu1 %v1914_v46, %s1675_s21 }
 0x10a   : > { %v307_v5 = vpop.permute.xlu0 %306 }
 0x10b   : > { %348 = vst.msk [vmem:[#allocation2 + $0x38] sm:$0xff] %vm340_vm3, %v307_v5  ;;  %v849_v48 = vpop.permute.xlu1 %848  ;;  %v1125_v29 = vld [vmem:[#allocation2 + $0x48] sm:$0xff] }
 0x10c   : > { %398 = vrot.lane.b32.xlu0 %v2107_v6, %s1676_s24  ;;  %889 = vst.msk [vmem:[#allocation2 + $0x40] sm:$0xff] %vm880_vm8, %v849_v48  ;;  %1473 = vmatpush3.xpose.msk.msra.mxu0 %vm1138_vm11, %v1125_v29  ;;  %s177_s24 = scalar_lea.vmem [#allocation3], %s1365_s10 }
 0x10d   : > { %947 = vrot.lane.b32.xlu1 %v909_v12, %s1679_s29  ;;  %1474 = vmatprep.subr.mxu0 %v1681_v51 }
 0x10e   : > { %v413_v46 = vpop.permute.xlu0 %412 }
 0x10f   : > { %454 = vst.msk [vmem:[#allocation2 + $0x38] sm:$0xff] %vm446_vm4, %v413_v46  ;;  %v962_v14 = vpop.permute.xlu1 %961 }
 0x110   : > { %506 = vrot.lane.b32.xlu0 %v2013_v36, %s1673_s11  ;;  %1002 = vst.msk [vmem:[#allocation2 + $0x40] sm:$0xff] %vm993_vm9, %v962_v14  ;;  %s1439_s11 = sshll.u32 %s1659_s16, 1 }
 0x111   : > { %1052 = vrot.lane.b32.xlu1 %v1014_v4, %s1680_s4  ;;  %s1274_s20 = sadd.s32 %s1655_s15, %s1439_s11  ;;  %s1684_s15 = smov [#allocation3]  }
 0x112   : > { %v521_v6 = vpop.permute.xlu0 %520  ;;  %s1583_s16 = sshll.u32 %s1684_s15, 4  ;;  %s1584_s16 = int_to_ptr.vmem [resolvable:$false] %s1583_s16 }
 0x113   : > { %562 = vst.msk [vmem:[#allocation2 + $0x38] sm:$0xff] %vm554_vm5, %v521_v6  ;;  %v1067_v33 = vpop.permute.xlu1 %1066  ;;  %s1585_s7 = scalar_lea.vmem %s1584_s16, 256 }
 0x114   : > { %619 = vrot.lane.b32.xlu0 %v2317_v44, %s1677_s27  ;;  %1107 = vst.msk [vmem:[#allocation2 + $0x40] sm:$0xff] %vm1098_vm10, %v1067_v33  ;;  %s1278_s27 = sshll.u32 %s177_s24, 4  ;;  %s1279_s27 = int_to_ptr.vmem [resolvable:$true] %s1278_s27 }
 0x115   : > { %832 = vrot.lane.b32.xlu1 %v1946_v63, %s1675_s21  ;;  %s1440_s21 = sshll.u32 %s1274_s20, 7  ;;  %s1579_s6 = scalar_lea.vmem %s1279_s27, 128 }
 0x116   : > { %v634_v22 = vpop.permute.xlu0 %633  ;;  %p1580_p13 = scmp.ne.s32.totalorder %s1279_s27, %s1579_s6  ;;  %p1586_p2 = scmp.lt.s32.totalorder %s1279_s27, %s1584_s16 }
 0x117   : > { %675 = vst.msk [vmem:[#allocation2 + $0x38] sm:$0xff] %vm667_vm6, %v634_v22  ;;  %v739_v36 = vpop.permute.xlu1 %738  ;;  %p1587_p4 = scmp.lt.s32.totalorder %s1585_s7, %s1579_s6 }
 0x118   : > { %724 = vrot.lane.b32.xlu0 %v2327_v3, %s1678_s28  ;;  %780 = vst.msk [vmem:[#allocation2 + $0x38] sm:$0xff] %vm772_vm7, %v739_v36  ;;  %p1581_p0 = pnand %p1580_p13, %p1756_p3 }
 0x119   : > { %1050 = vrot.lane.b32.xlu1 %v2250_v9, %s1680_s4  ;;  %v1132_v9 = vld [vmem:[%s2556_s2] sm:$0xff]  ;;  %s1276_s4 = scalar_lea.hbm %s2557_s3, %s1440_s21  ;;  %p1588_p5 = por %p1587_p4, %p1586_p2 }
 0x11a   : > { %v305_v26 = vpop.permute.xlu0 %304  ;;  %p1582_p1 = pneg %p1581_p0 }
 0x11b   : > { %347 = vst.msk [vmem:[#allocation2 + $0x30] sm:$0xff] %vm340_vm3, %v305_v26  ;;  %v847_v34 = vpop.permute.xlu1 %846  ;;  %v1124_v63 = vld [vmem:[#allocation2 + $0x40] sm:$0xff] }
 0x11c   : > { %945 = vrot.lane.b32.xlu0 %v2240_v49, %s1679_s29  ;;  %888 = vst.msk [vmem:[#allocation2 + $0x38] sm:$0xff] %vm880_vm8, %v847_v34  ;;  %1475 = vmatpush3.xpose.msk.msra.mxu0 %vm1138_vm11, %v1124_v63  ;;  %p1589_p6 = pnand %p1588_p5, %p1582_p1 }
 0x11d   : > { %1476 = vmatprep.subr.mxu0 %v1681_v51 }
 0x11e   : > { %v411_v38 = vpop.permute.xlu0 %410 }
 0x11f   : > { %453 = vst.msk [vmem:[#allocation2 + $0x30] sm:$0xff] %vm446_vm4, %v411_v38  ;;  %v960_v59 = vpop.permute.xlu1 %959 }
 0x120   : > { %1001 = vst.msk [vmem:[#allocation2 + $0x38] sm:$0xff] %vm993_vm9, %v960_v59  ;;  %1135 = vperm.xlu0 %1578, %v1132_v9  }
 0x122   : > { %v519_v49 = vpop.permute.xlu0 %518 }
 0x123   : > { %561 = vst.msk [vmem:[#allocation2 + $0x30] sm:$0xff] %vm554_vm5, %v519_v49  ;;  %v1065_v39 = vpop.permute.xlu1 %1064  ;;  %v1115_v49 = vld [vmem:[%s2555_s1] sm:$0xff] }
 0x124   : > { %1106 = vst.msk [vmem:[#allocation2 + $0x38] sm:$0xff] %vm1098_vm10, %v1065_v39 }
 0x126   : > { %v632_v21 = vpop.permute.xlu0 %631 }
 0x127   : > { %674 = vst.msk [vmem:[#allocation2 + $0x30] sm:$0xff] %vm667_vm6, %v632_v21  ;;  %v737_v41 = vpop.permute.xlu1 %736 }
 0x128   : > { %779 = vst.msk [vmem:[#allocation2 + $0x30] sm:$0xff] %vm772_vm7, %v737_v41 }
 0x12a   : > { %v303_v43 = vpop.permute.xlu0 %302 }
 0x12b   : > { %346 = vst.msk [vmem:[#allocation2 + $0x28] sm:$0xff] %vm340_vm3, %v303_v43  ;;  %v845_v44 = vpop.permute.xlu1 %844  ;;  %v1123_v7 = vld [vmem:[#allocation2 + $0x38] sm:$0xff] }
 0x12c   : > { %887 = vst.msk [vmem:[#allocation2 + $0x30] sm:$0xff] %vm880_vm8, %v845_v44  ;;  %1477 = vmatpush3.xpose.msk.msra.mxu0 %vm1138_vm11, %v1123_v7 }
 0x12d   : > { %1478 = vmatprep.subr.mxu0 %v1681_v51 }
 0x12e   : > { %v409_v37 = vpop.permute.xlu0 %408 }
 0x12f   : > { %452 = vst.msk [vmem:[#allocation2 + $0x28] sm:$0xff] %vm446_vm4, %v409_v37  ;;  %v958_v16 = vpop.permute.xlu1 %957 }
 0x130   : > { %1000 = vst.msk [vmem:[#allocation2 + $0x30] sm:$0xff] %vm993_vm9, %v958_v16 }
 0x132   : > { %v517_v45 = vpop.permute.xlu0 %516 }
 0x133   : > { %560 = vst.msk [vmem:[#allocation2 + $0x28] sm:$0xff] %vm554_vm5, %v517_v45  ;;  %v1063_v3 = vpop.permute.xlu1 %1062 }
 0x134   : > { %1105 = vst.msk [vmem:[#allocation2 + $0x30] sm:$0xff] %vm1098_vm10, %v1063_v3 }
 0x136   : > { %v630_v2 = vpop.permute.xlu0 %629 }
 0x137   : > { %673 = vst.msk [vmem:[#allocation2 + $0x28] sm:$0xff] %vm667_vm6, %v630_v2  ;;  %v735_v40 = vpop.permute.xlu1 %734 }
 0x138   : > { %778 = vst.msk [vmem:[#allocation2 + $0x28] sm:$0xff] %vm772_vm7, %v735_v40 }
 0x13a   : > { %v301_v50 = vpop.permute.xlu0 %300 }
 0x13b   : > { %345 = vst.msk [vmem:[#allocation2 + $0x20] sm:$0xff] %vm340_vm3, %v301_v50  ;;  %v843_v52 = vpop.permute.xlu1 %842  ;;  %v1122_v53 = vld [vmem:[#allocation2 + $0x30] sm:$0xff] }
 0x13c   : > { %886 = vst.msk [vmem:[#allocation2 + $0x28] sm:$0xff] %vm880_vm8, %v843_v52  ;;  %1479 = vmatpush3.xpose.msk.msra.mxu0 %vm1138_vm11, %v1122_v53 }
 0x13d   : > { %1480 = vmatprep.subr.mxu0 %v1681_v51 }
 0x13e   : > { %v407_v30 = vpop.permute.xlu0 %406 }
 0x13f   : > { %451 = vst.msk [vmem:[#allocation2 + $0x20] sm:$0xff] %vm446_vm4, %v407_v30  ;;  %v956_v42 = vpop.permute.xlu1 %955 }
 0x140   : > { %999 = vst.msk [vmem:[#allocation2 + $0x28] sm:$0xff] %vm993_vm9, %v956_v42 }
 0x142   : > { %v515_v55 = vpop.permute.xlu0 %514 }
 0x143   : > { %559 = vst.msk [vmem:[#allocation2 + $0x20] sm:$0xff] %vm554_vm5, %v515_v55  ;;  %v1061_v56 = vpop.permute.xlu1 %1060 }
 0x144   : > { %1104 = vst.msk [vmem:[#allocation2 + $0x28] sm:$0xff] %vm1098_vm10, %v1061_v56 }
 0x146   : > { %v628_v57 = vpop.permute.xlu0 %627 }
 0x147   : > { %672 = vst.msk [vmem:[#allocation2 + $0x20] sm:$0xff] %vm667_vm6, %v628_v57  ;;  %v733_v58 = vpop.permute.xlu1 %732 }
 0x148   : > { %777 = vst.msk [vmem:[#allocation2 + $0x20] sm:$0xff] %vm772_vm7, %v733_v58 }
 0x14a   : > { %v299_v24 = vpop.permute.xlu0 %298 }
 0x14b   : > { %344 = vst.msk [vmem:[#allocation2 + $0x18] sm:$0xff] %vm340_vm3, %v299_v24  ;;  %v841_v28 = vpop.permute.xlu1 %840  ;;  %v1121_v23 = vld [vmem:[#allocation2 + $0x28] sm:$0xff] }
 0x14c   : > { %885 = vst.msk [vmem:[#allocation2 + $0x20] sm:$0xff] %vm880_vm8, %v841_v28  ;;  %1481 = vmatpush3.xpose.msk.msra.mxu0 %vm1138_vm11, %v1121_v23 }
 0x14d   : > { %1482 = vmatprep.subr.mxu0 %v1681_v51 }
 0x14e   : > { %v405_v1 = vpop.permute.xlu0 %404 }
 0x14f   : > { %450 = vst.msk [vmem:[#allocation2 + $0x18] sm:$0xff] %vm446_vm4, %v405_v1  ;;  %v954_v60 = vpop.permute.xlu1 %953 }
 0x150   : > { %998 = vst.msk [vmem:[#allocation2 + $0x20] sm:$0xff] %vm993_vm9, %v954_v60 }
 0x152   : > { %v513_v32 = vpop.permute.xlu0 %512 }
 0x153   : > { %558 = vst.msk [vmem:[#allocation2 + $0x18] sm:$0xff] %vm554_vm5, %v513_v32  ;;  %v1059_v61 = vpop.permute.xlu1 %1058 }
 0x154   : > { %1103 = vst.msk [vmem:[#allocation2 + $0x20] sm:$0xff] %vm1098_vm10, %v1059_v61 }
 0x156   : > { %v626_v20 = vpop.permute.xlu0 %625 }
 0x157   : > { %671 = vst.msk [vmem:[#allocation2 + $0x18] sm:$0xff] %vm667_vm6, %v626_v20  ;;  %v731_v0 = vpop.permute.xlu1 %730 }
 0x158   : > { %776 = vst.msk [vmem:[#allocation2 + $0x18] sm:$0xff] %vm772_vm7, %v731_v0 }
 0x15a   : > { %v297_v8 = vpop.permute.xlu0 %296 }
 0x15b   : > { %343 = vst.msk [vmem:[#allocation2 + $0x10] sm:$0xff] %vm340_vm3, %v297_v8  ;;  %v839_v47 = vpop.permute.xlu1 %838  ;;  %v1120_v31 = vld [vmem:[#allocation2 + $0x20] sm:$0xff] }
 0x15c   : > { %884 = vst.msk [vmem:[#allocation2 + $0x18] sm:$0xff] %vm880_vm8, %v839_v47  ;;  %1483 = vmatpush3.xpose.msk.msra.mxu0 %vm1138_vm11, %v1120_v31 }
 0x15d   : > { %1484 = vmatprep.subr.mxu0 %v1681_v51 }
 0x15e   : > { %v403_v10 = vpop.permute.xlu0 %402 }
 0x15f   : > { %449 = vst.msk [vmem:[#allocation2 + $0x10] sm:$0xff] %vm446_vm4, %v403_v10  ;;  %v952_v11 = vpop.permute.xlu1 %951 }
 0x160   : > { %997 = vst.msk [vmem:[#allocation2 + $0x18] sm:$0xff] %vm993_vm9, %v952_v11 }
 0x162   : > { %v511_v13 = vpop.permute.xlu0 %510 }
 0x163   : > { %557 = vst.msk [vmem:[#allocation2 + $0x10] sm:$0xff] %vm554_vm5, %v511_v13  ;;  %v1057_v54 = vpop.permute.xlu1 %1056 }
 0x164   : > { %1102 = vst.msk [vmem:[#allocation2 + $0x18] sm:$0xff] %vm1098_vm10, %v1057_v54 }
 0x166   : > { %v624_v18 = vpop.permute.xlu0 %623 }
 0x167   : > { %670 = vst.msk [vmem:[#allocation2 + $0x10] sm:$0xff] %vm667_vm6, %v624_v18  ;;  %v729_v17 = vpop.permute.xlu1 %728 }
 0x168   : > { %775 = vst.msk [vmem:[#allocation2 + $0x10] sm:$0xff] %vm772_vm7, %v729_v17 }
 0x16a   : > { %v295_v19 = vpop.permute.xlu0 %294 }
 0x16b   : > { %342 = vst.msk [vmem:[#allocation2 + $0x8] sm:$0xff] %vm340_vm3, %v295_v19  ;;  %v837_v15 = vpop.permute.xlu1 %836  ;;  %v1119_v25 = vld [vmem:[#allocation2 + $0x18] sm:$0xff] }
 0x16c   : > { %883 = vst.msk [vmem:[#allocation2 + $0x10] sm:$0xff] %vm880_vm8, %v837_v15  ;;  %1485 = vmatpush3.xpose.msk.msra.mxu0 %vm1138_vm11, %v1119_v25 }
 0x16d   : > { %1486 = vmatprep.subr.mxu0 %v1681_v51 }
 0x16e   : > { %v401_v62 = vpop.permute.xlu0 %400 }
 0x16f   : > { %448 = vst.msk [vmem:[#allocation2 + $0x8] sm:$0xff] %vm446_vm4, %v401_v62  ;;  %v950_v5 = vpop.permute.xlu1 %949 }
 0x170   : > { %996 = vst.msk [vmem:[#allocation2 + $0x10] sm:$0xff] %vm993_vm9, %v950_v5 }
 0x172   : > { %v509_v12 = vpop.permute.xlu0 %508 }
 0x173   : > { %556 = vst.msk [vmem:[#allocation2 + $0x8] sm:$0xff] %vm554_vm5, %v509_v12  ;;  %v1055_v27 = vpop.permute.xlu1 %1054 }
 0x174   : > { %1101 = vst.msk [vmem:[#allocation2 + $0x10] sm:$0xff] %vm1098_vm10, %v1055_v27 }
 0x176   : > { %v622_v48 = vpop.permute.xlu0 %621 }
 0x177   : > { %669 = vst.msk [vmem:[#allocation2 + $0x8] sm:$0xff] %vm667_vm6, %v622_v48  ;;  %v727_v29 = vpop.permute.xlu1 %726 }
 0x178   : > { %774 = vst.msk [vmem:[#allocation2 + $0x8] sm:$0xff] %vm772_vm7, %v727_v29 }
 0x17a   : > { %v293_v46 = vpop.permute.xlu0 %292 }
 0x17b   : > { %341 = vst.msk [vmem:[#allocation2] sm:$0xff] %vm340_vm3, %v293_v46  ;;  %v835_v4 = vpop.permute.xlu1 %834  ;;  %v1118_v14 = vld [vmem:[#allocation2 + $0x10] sm:$0xff] }
 0x17c   : > { %882 = vst.msk [vmem:[#allocation2 + $0x8] sm:$0xff] %vm880_vm8, %v835_v4  ;;  %1487 = vmatpush3.xpose.msk.msra.mxu0 %vm1138_vm11, %v1118_v14 }
 0x17d   : > { %1488 = vmatprep.subr.mxu0 %v1681_v51 }
 0x17e   : > { %v399_v6 = vpop.permute.xlu0 %398 }
 0x17f   : > { %447 = vst.msk [vmem:[#allocation2] sm:$0xff] %vm446_vm4, %v399_v6  ;;  %v948_v33 = vpop.permute.xlu1 %947 }
 0x180   : > { %995 = vst.msk [vmem:[#allocation2 + $0x8] sm:$0xff] %vm993_vm9, %v948_v33 }
 0x182   : > { %v507_v22 = vpop.permute.xlu0 %506 }
 0x183   : > { %555 = vst.msk [vmem:[#allocation2] sm:$0xff] %vm554_vm5, %v507_v22  ;;  %v1053_v36 = vpop.permute.xlu1 %1052 }
 0x184   : > { %1100 = vst.msk [vmem:[#allocation2 + $0x8] sm:$0xff] %vm1098_vm10, %v1053_v36 }
 0x186   : > { %v620_v26 = vpop.permute.xlu0 %619 }
 0x187   : > { %668 = vst.msk [vmem:[#allocation2] sm:$0xff] %vm667_vm6, %v620_v26  ;;  %v833_v34 = vpop.permute.xlu1 %832 }
 0x18a   : > { %v725_v63 = vpop.permute.xlu0 %724 }
 0x18b   : > { %773 = vst.msk [vmem:[#allocation2] sm:$0xff] %vm772_vm7, %v725_v63  ;;  %v1117_v35 = vld [vmem:[#allocation2 + $0x8] sm:$0xff]  ;;  %v1051_v9 = vpop.permute.xlu1 %1050 }
 0x18c   : > { %881 = vst.msk [vmem:[#allocation2] sm:$0xff] %vm880_vm8, %v833_v34  ;;  %1489 = vmatpush3.xpose.msk.msra.mxu0 %vm1138_vm11, %v1117_v35 }
 0x18d   : > { %1490 = vmatprep.subr.mxu0 %v1681_v51 }
 0x18e   : > { %v946_v38 = vpop.permute.xlu0 %945 }
 0x18f   : > { %994 = vst.msk [vmem:[#allocation2] sm:$0xff] %vm993_vm9, %v946_v38 }
 0x190   : > { %1099 = vst.msk [vmem:[#allocation2] sm:$0xff] %vm1098_vm10, %v1051_v9 }
 0x197   : > { %v1116_v59 = vld [vmem:[#allocation2] sm:$0xff] }
 0x198   : > { %1491 = vmatpush3.xpose.msk.msra.mxu0 %vm1138_vm11, %v1116_v59 }
 0x19b   : > { %1493 = vmatmul.mubr.msk.f32.vlgmr.msra.gmra.mxu0 %vm1138_vm11, %v1115_v49  ;;  %v1136_v51 = vpop.permute.xlu0 %1135 }
 0x25b   : > { %v1256_v39 = vpop.f32.mrf.mxu0 }
 0x25c   : > { %v1257_v21 = vadd.f32 %v1256_v39, %v1136_v51 }
 0x25d   : > { %v1494_v41 = vpop.f32.mrf.mxu0 }
 0x25e   : > { %v1260_v43 = vmax.f32 %v1257_v21, 0.0 }
 0x260   : > { %1261 = vst [vmem:[%s177_s24] sm:$0xff] %v1260_v43 }
 0x261   : > { %1592 = shalt.err (!%p1589_p6)
}
 0x262   : > { %s1593_s8 = scalar_lea.hbm %s1276_s4, 128  ;;  %s1597_s11 = scalar_lea.hbm %s2557_s3, 512 }
 0x263   : > { %p1594_p7 = scmp.ne.s32.totalorder %s1276_s4, %s1593_s8  ;;  %p1598_p11 = scmp.lt.s32.totalorder %s1276_s4, %s2557_s3 }
 0x264   : > { %p1599_p12 = scmp.lt.s32.totalorder %s1597_s11, %s1593_s8 }
 0x265   : > { %p1595_p9 = pnand %p1594_p7, %p1756_p3 }
 0x266   : > { %p1600_p13 = por %p1599_p12, %p1598_p11 }
 0x267   : > { %p1596_p10 = pneg %p1595_p9 }
 0x269   : > { %p1601_p0 = pnand %p1600_p13, %p1596_p10 }
 0x26b   : > { %1604 = shalt.err (!%p1601_p0)
}
 0x26c   : > { %1496 = dma.vmem_to_hbm [thread:$0]  (%p1756_p3), %s1279_s27, 128, %s1276_s4, %s1263_s5  }
 0x26d PF: > { %p1502_p1 = scmp.ge.s32.totalorder %s1671_s19, 2  ;;  %s1290_s24 = sand.u32 1, %s1643_s12  }
 0x26e   : > { %s1291_s28 = scalar_lea.sflag [#allocation4], %s1290_s24 }
 0x26f   : > { %p1499_p2 = pnand %p1502_p1, %p1765_p8 }
 0x271   : > { %p1500_p4 = pneg %p1499_p2 }
 0x273   : > { %1638 = dma.done.wait (%p1500_p4), %s1291_s28, 128  }
 0x274   : > { %1640 = vsyncadd (%p1500_p4), %s1291_s28, 4294967168  ;;  %s16_s19 = sadd.s32 1, %s1671_s19   ;;  %s2560_s12 = smov %s1647_s13 }
 0x275   : > { %p13_p5 = scmp.ge.s32.totalorder %s16_s19, 6   ;;  %s2561_s13 = smov %s1651_s14 }
 0x276   : > { %s2562_s14 = smov %s1774_s30  ;;  %s2563_s15 = smov %s1663_s17 }
 0x277   : > { %s2564_s16 = smov %s1667_s18  ;;  %s2565_s17 = smov %s2568_s22 }
 0x278   : > { %s2566_s18 = smov %s2572_s23  ;;  %15 = sbr.rel (!%p13_p5) target bundleno = 5 (0x5), region = 70 }
 0x27d   :  { %1296 = vsyncpa [#allocation4], 1 }
 0x27e   :  { %1298 = vsyncpa [#allocation4 + $0x1], 1 }

</bundles_post_ra>
